<compile_context>
chip_gen: v7x
topology: tpu7x:2x2x1
jax: 0.10.0
libtpu: 0.0.40
codegen_flags: <defaults>
</compile_context>

<pallas_src>
import jax
import jax.numpy as jnp
from jax import lax
from jax.experimental import pallas as pl
from jax.experimental.pallas import tpu as pltpu

# ---- config mirroring Decoder(vocab_size, pad_token, embedding_dim,
#      hidden_units, n_layers, bidirectional=False, res_co=True, ...) ----
VOCAB = 64
PAD = 0
EMB = 16
HID = 32
NLAYERS = 2
TOTAL_HID = HID          # bidirectional=False
B = 8                    # batch
T = 8                    # decode steps (folded into the kernel grid)
EPS = 1e-5
LANE = 128               # lane-dense logits width (VOCAB padded to 128)


def decoder_kernel(onehot_ref, state_in_ref, w0_ref, w1_ref, wout_ref,
                   logits_ref, state_out_ref):
    H = HID
    t = pl.program_id(0)

    # ---- recurrent state lives in the resident state output block ---------
    @pl.when(t == 0)
    def _():
        state_out_ref[...] = state_in_ref[...]

    st = state_out_ref[...]                                    # (B, 4H) f32
    h0, h1 = st[:, 0:H], st[:, H:2 * H]
    c0, c1 = st[:, 2 * H:3 * H], st[:, 3 * H:4 * H]

    onehot = onehot_ref[0]                                     # (B, VOCAB) bf16

    # Gate columns pre-ordered [i, f, o, g]: sigmoid lanes [0,3H), tanh [3H,4H).
    lane = lax.broadcasted_iota(jnp.int32, (B, 4 * H), 1)
    sig_lanes = lane < 3 * H

    def activate(pre):
        # sigmoid(x) = 0.5*tanh(0.5*x) + 0.5  ->  one EUP pass for all gates
        th = jnp.tanh(jnp.where(sig_lanes, 0.5 * pre, pre))
        return jnp.where(sig_lanes, 0.5 * th + 0.5, th)

    def lstm(pre, c):
        act = activate(pre)
        i, f = act[:, 0:H], act[:, H:2 * H]
        o, g = act[:, 2 * H:3 * H], act[:, 3 * H:4 * H]
        c_new = f * c + i * g
        h_new = o * jnp.tanh(c_new)
        return h_new, c_new

    # ---- layer 0: LN+embedding pre-folded -> [onehot | h0] @ w0 + bias ----
    inp0 = jnp.concatenate([onehot, h0.astype(jnp.bfloat16)], axis=1)  # (B, V+H)
    g0 = (jnp.dot(inp0, w0_ref[0:VOCAB + H, :],
                  preferred_element_type=jnp.float32)
          + w0_ref[VOCAB + H:VOCAB + H + 1, :].astype(jnp.float32))    # (B, 5H)
    h0n, c0n = lstm(g0[:, 0:4 * H], c0)
    res = jnp.maximum(g0[:, 4 * H:5 * H], 0.0)                 # ReLU residual
    # inter-layer dropout_rnn: identity in eval mode

    # ---- layer 1: fused [h0n | h1] @ [Wih1; Whh1] + bias row --------------
    inp1 = jnp.concatenate([h0n, h1], axis=1).astype(jnp.bfloat16)     # (B, 2H)
    g1 = (jnp.dot(inp1, w1_ref[0:2 * H, :],
                  preferred_element_type=jnp.float32)
          + w1_ref[2 * H:2 * H + 1, :].astype(jnp.float32))            # (B, 4H)
    h1n, c1n = lstm(g1, c1)

    # ---- residual add + vocab projection (Dropout = identity in eval) ----
    ht = (res + h1n).astype(jnp.bfloat16)                              # (B, H)
    logits_ref[0] = (jnp.dot(ht, wout_ref[0:H, :],
                             preferred_element_type=jnp.float32)
                     + wout_ref[H:H + 1, :].astype(jnp.float32))       # (B, 128)

    # ---- lane-dense packed state writeback (resident, HBM write at end) --
    state_out_ref[...] = jnp.concatenate([h0n, h1n, c0n, c1n], axis=1)


def _reorder_gates(w):
    # PyTorch LSTM gate order [i, f, g, o] -> kernel order [i, f, o, g]
    return jnp.concatenate([w[..., :2 * HID],
                            w[..., 3 * HID:4 * HID],
                            w[..., 2 * HID:3 * HID]], axis=-1)


def pack_params(p):
    """Pack per-op params into a few lane-dense bf16 VMEM slabs (host-side)."""
    # --- fold LayerNorm into the embedding table (eval mode, params fixed) --
    emb = p["emb"]                                                # (V, EMB)
    mu = emb.mean(-1, keepdims=True)
    var = ((emb - mu) ** 2).mean(-1, keepdims=True)
    ln_emb = (emb - mu) * lax.rsqrt(var + EPS) * p["ln_g"] + p["ln_b"]

    # --- layer-0 slab: rows [ln_emb@(Wih0|res_w); Whh0|0; bias],
    #     cols [gates(4H) | residual(H)] ------------------------------------
    x_rows = jnp.concatenate([ln_emb @ _reorder_gates(p["wih0"]),
                              ln_emb @ p["res_w"]], axis=1)       # (V, 5H)
    h_rows = jnp.concatenate([_reorder_gates(p["whh0"]),
                              jnp.zeros((HID, TOTAL_HID), jnp.float32)],
                             axis=1)                              # (H, 5H)
    b_row = jnp.concatenate([_reorder_gates(p["b0"]), p["res_b"]], axis=1)
    w0 = jnp.concatenate([x_rows, h_rows, b_row],
                         axis=0).astype(jnp.bfloat16)             # (V+H+1, 5H)

    w1 = jnp.concatenate([_reorder_gates(p["wih1"]),
                          _reorder_gates(p["whh1"]),
                          _reorder_gates(p["b1"])],
                         axis=0).astype(jnp.bfloat16)             # (2H+1, 4H)

    wout = jnp.concatenate([p["lin_w"], p["lin_b"]], axis=0)      # (H+1, V)
    wout = jnp.pad(wout, ((0, 0), (0, LANE - VOCAB))
                   ).astype(jnp.bfloat16)                         # (H+1, 128)

    return dict(w0=w0, w1=w1, wout=wout)


@jax.jit
def decoder_forward(tokens, state, packed):
    """tokens: (B, T) int32; state: (B, 4*HID) packed [h0|h1|c0|c1]."""
    t_steps = tokens.shape[1]

    # one-hot token codes (exact in bf16); per-step block fed by the pipeline
    onehot = jnp.transpose(jax.nn.one_hot(tokens, VOCAB, dtype=jnp.bfloat16),
                           (1, 0, 2))                             # (T, B, V)

    inputs = (onehot, state, packed["w0"], packed["w1"], packed["wout"])

    in_specs = [
        pl.BlockSpec((1, B, VOCAB), lambda t: (t, 0, 0)),         # per-step
        pl.BlockSpec((B, 4 * HID), lambda t: (0, 0)),             # resident
        pl.BlockSpec(packed["w0"].shape, lambda t: (0, 0)),       # resident
        pl.BlockSpec(packed["w1"].shape, lambda t: (0, 0)),       # resident
        pl.BlockSpec(packed["wout"].shape, lambda t: (0, 0)),     # resident
    ]
    out_specs = (
        pl.BlockSpec((1, B, LANE), lambda t: (t, 0, 0)),          # lane-dense
        pl.BlockSpec((B, 4 * HID), lambda t: (0, 0)),             # resident
    )
    out_shape = (
        jax.ShapeDtypeStruct((t_steps, B, LANE), jnp.float32),
        jax.ShapeDtypeStruct((B, 4 * HID), jnp.float32),
    )

    flops_step = 2 * B * ((VOCAB + HID) * 5 * HID
                          + 2 * HID * 4 * HID
                          + HID * LANE)
    transc_step = B * (2 * 4 * HID + 2 * HID)
    bytes_accessed = (sum(int(a.size) * a.dtype.itemsize for a in inputs)
                      + t_steps * B * LANE * 4 + B * 4 * HID * 4)

    logits_pad, state_out = pl.pallas_call(
        decoder_kernel,
        grid=(t_steps,),
        out_shape=out_shape,
        in_specs=in_specs,
        out_specs=out_specs,
        input_output_aliases={1: 1},          # recurrent state updated in place
        compiler_params=pltpu.CompilerParams(
            dimension_semantics=("arbitrary",)),
        cost_estimate=pl.CostEstimate(flops=t_steps * flops_step,
                                      transcendentals=t_steps * transc_step,
                                      bytes_accessed=bytes_accessed),
    )(*inputs)

    logits = jnp.transpose(logits_pad[:, :, :VOCAB], (1, 0, 2))   # (B, T, V)
    return logits, state_out


def make_params(key):
    ks = jax.random.split(key, 16)
    s = 0.1
    return dict(
        emb=s * jax.random.normal(ks[0], (VOCAB, EMB), jnp.float32),
        ln_g=1.0 + s * jax.random.normal(ks[12], (1, EMB), jnp.float32),
        ln_b=s * jax.random.normal(ks[13], (1, EMB), jnp.float32),
        wih0=s * jax.random.normal(ks[1], (EMB, 4 * HID), jnp.float32),
        whh0=s * jax.random.normal(ks[2], (HID, 4 * HID), jnp.float32),
        b0=(s * jax.random.normal(ks[3], (1, 4 * HID), jnp.float32)
            + s * jax.random.normal(ks[4], (1, 4 * HID), jnp.float32)),  # b_ih+b_hh
        wih1=s * jax.random.normal(ks[5], (HID, 4 * HID), jnp.float32),
        whh1=s * jax.random.normal(ks[6], (HID, 4 * HID), jnp.float32),
        b1=(s * jax.random.normal(ks[7], (1, 4 * HID), jnp.float32)
            + s * jax.random.normal(ks[8], (1, 4 * HID), jnp.float32)),
        res_w=s * jax.random.normal(ks[9], (EMB, TOTAL_HID), jnp.float32),
        res_b=s * jax.random.normal(ks[10], (1, TOTAL_HID), jnp.float32),
        lin_w=s * jax.random.normal(ks[11], (TOTAL_HID, VOCAB), jnp.float32),
        lin_b=s * jax.random.normal(ks[14], (1, VOCAB), jnp.float32),
    )


def reference(tokens, h0, c0, p):
    """Pure-JAX reference of the PyTorch forward (eval mode), T steps."""
    x = p["emb"][tokens]                                          # (B, T, EMB)
    mu = x.mean(-1, keepdims=True)
    var = ((x - mu) ** 2).mean(-1, keepdims=True)
    xn = (x - mu) / jnp.sqrt(var + EPS) * p["ln_g"] + p["ln_b"]

    def cell(inp, h, c, wih, whh, b):
        g = inp @ wih + h @ whh + b
        i = jax.nn.sigmoid(g[:, :HID])
        f = jax.nn.sigmoid(g[:, HID:2 * HID])
        gg = jnp.tanh(g[:, 2 * HID:3 * HID])
        o = jax.nn.sigmoid(g[:, 3 * HID:])
        c2 = f * c + i * gg
        return o * jnp.tanh(c2), c2

    h = [h0[0], h0[1]]
    c = [c0[0], c0[1]]
    outs = []
    for t in range(tokens.shape[1]):
        xt = xn[:, t]
        h0n, c0n = cell(xt, h[0], c[0], p["wih0"], p["whh0"], p["b0"])
        h1n, c1n = cell(h0n, h[1], c[1], p["wih1"], p["whh1"], p["b1"])
        res = jnp.maximum(xt @ p["res_w"] + p["res_b"], 0.0)
        ht = res + h1n
        outs.append(ht @ p["lin_w"] + p["lin_b"])
        h = [h0n, h1n]
        c = [c0n, c1n]
    logits = jnp.stack(outs, axis=1)                              # (B, T, V)
    return logits, (jnp.stack(h), jnp.stack(c))


if __name__ == "__main__":
    key = jax.random.PRNGKey(0)
    kp, kt, kh, kc = jax.random.split(key, 4)
    params = make_params(kp)
    packed = pack_params(params)

    tokens = jax.random.randint(kt, (B, T), 0, VOCAB, dtype=jnp.int32)
    h0 = 0.1 * jax.random.normal(kh, (NLAYERS, B, HID), jnp.float32)
    c0 = 0.1 * jax.random.normal(kc, (NLAYERS, B, HID), jnp.float32)
    state = jnp.concatenate([h0[0], h0[1], c0[0], c0[1]], axis=1)  # (B, 4H)

    logits, state_out = decoder_forward(tokens, state, packed)
    jax.block_until_ready((logits, state_out))

    h_out = jnp.stack([state_out[:, :HID], state_out[:, HID:2 * HID]])
    c_out = jnp.stack([state_out[:, 2 * HID:3 * HID], state_out[:, 3 * HID:]])

    ref_logits, (ref_h, ref_c) = reference(tokens, h0, c0, params)
    assert jnp.allclose(logits, ref_logits, rtol=2e-2, atol=2e-2)
    assert jnp.allclose(h_out, ref_h, rtol=2e-2, atol=2e-2)
    assert jnp.allclose(c_out, ref_c, rtol=2e-2, atol=2e-2)

    print("KERNEL_OK")
</pallas_src>

<mosaic_0001>
module attributes {stable_mosaic.version = 11 : i64} {
  func.func @decoder_kernel(%arg0: i32, %arg1: memref<1x8x64xbf16, #tpu.memory_space<vmem>>, %arg2: memref<8x128xf32, #tpu.memory_space<vmem>>, %arg3: memref<97x160xbf16, #tpu.memory_space<vmem>>, %arg4: memref<65x128xbf16, #tpu.memory_space<vmem>>, %arg5: memref<33x128xbf16, #tpu.memory_space<vmem>>, %arg6: memref<1x8x128xf32, #tpu.memory_space<vmem>>, %arg7: memref<8x128xf32, #tpu.memory_space<vmem>>) attributes {dimension_semantics = [#tpu.dimension_semantics<arbitrary>], iteration_bounds = array<i64: 8>, scalar_prefetch = 0 : i64, scratch_operands = 0 : i64, tpu.core_type = #tpu.core_type<tc>, window_params = [{transform_indices = @transform_0, window_bounds = array<i64: 1, 8, 64>}, {pipeline_mode = #tpu.pipeline_mode<synchronous>, transform_indices = @transform_1, window_bounds = array<i64: 8, 128>}, {pipeline_mode = #tpu.pipeline_mode<synchronous>, transform_indices = @transform_2, window_bounds = array<i64: 97, 160>}, {pipeline_mode = #tpu.pipeline_mode<synchronous>, transform_indices = @transform_3, window_bounds = array<i64: 65, 128>}, {pipeline_mode = #tpu.pipeline_mode<synchronous>, transform_indices = @transform_4, window_bounds = array<i64: 33, 128>}, {transform_indices = @transform_5, window_bounds = array<i64: 1, 8, 128>}, {pipeline_mode = #tpu.pipeline_mode<synchronous>, transform_indices = @transform_6, window_bounds = array<i64: 8, 128>}]} {
    %c0_i32 = arith.constant 0 : i32
    %0 = arith.cmpi eq, %arg0, %c0_i32 : i32
    %1 = arith.extui %0 : i1 to i32
    %c0_i32_0 = arith.constant 0 : i32
    %2 = arith.cmpi ne, %1, %c0_i32_0 : i32
    scf.if %2 {
      %c0_28 = arith.constant 0 : index
      %c0_29 = arith.constant 0 : index
      %82 = vector.load %arg2[%c0_28, %c0_29] : memref<8x128xf32, #tpu.memory_space<vmem>>, vector<8x128xf32>
      %c0_30 = arith.constant 0 : index
      %c0_31 = arith.constant 0 : index
      %83 = vector.load %arg7[%c0_30, %c0_31] : memref<8x128xf32, #tpu.memory_space<vmem>>, vector<8x128xf32>
      tpu.vector_store %arg7[%c0_30, %c0_31], %82 {strides = array<i32>} : memref<8x128xf32, #tpu.memory_space<vmem>>, vector<8x128xf32>,
    } else {
    }
    %c0 = arith.constant 0 : index
    %c0_1 = arith.constant 0 : index
    %3 = vector.load %arg7[%c0, %c0_1] : memref<8x128xf32, #tpu.memory_space<vmem>>, vector<8x128xf32>
    %4 = vector.extract_strided_slice %3 {offsets = [0, 0], sizes = [8, 32], strides = [1, 1]} : vector<8x128xf32> to vector<8x32xf32>
    %5 = vector.extract_strided_slice %3 {offsets = [0, 32], sizes = [8, 32], strides = [1, 1]} : vector<8x128xf32> to vector<8x32xf32>
    %6 = vector.extract_strided_slice %3 {offsets = [0, 64], sizes = [8, 32], strides = [1, 1]} : vector<8x128xf32> to vector<8x32xf32>
    %7 = vector.extract_strided_slice %3 {offsets = [0, 96], sizes = [8, 32], strides = [1, 1]} : vector<8x128xf32> to vector<8x32xf32>
    %c0_2 = arith.constant 0 : index
    %c0_3 = arith.constant 0 : index
    %c0_4 = arith.constant 0 : index
    %8 = vector.load %arg1[%c0_2, %c0_3, %c0_4] : memref<1x8x64xbf16, #tpu.memory_space<vmem>>, vector<1x8x64xbf16>
    %9 = vector.shape_cast %8 : vector<1x8x64xbf16> to vector<8x64xbf16>
    %10 = tpu.iota {dimensions = array<i32: 1>} : vector<8x128xi32>
    %c96_i32 = arith.constant 96 : i32
    %11 = vector.broadcast %c96_i32 : i32 to vector<8x128xi32>
    %12 = arith.cmpi slt, %10, %11 : vector<8x128xi32>
    %13 = arith.truncf %4 : vector<8x32xf32> to vector<8x32xbf16>
    %14 = tpu.concatenate %9, %13 in 1 : vector<8x64xbf16>, vector<8x32xbf16> -> vector<8x96xbf16>
    %c0_5 = arith.constant 0 : index
    %c0_6 = arith.constant 0 : index
    %15 = vector.load %arg3[%c0_5, %c0_6] : memref<97x160xbf16, #tpu.memory_space<vmem>>, vector<96x160xbf16>
    %cst = arith.constant dense<0.000000e+00> : vector<8x160xf32>
    %16 = tpu.matmul %14, %15, %cst {dimension_numbers = #tpu.dot_dimension_numbers<[1], [0], [0], [1], [0, 0, 1, 1], [], []>} : vector<8x96xbf16>, vector<96x160xbf16>, vector<8x160xf32> -> vector<8x160xf32>
    %c96 = arith.constant 96 : index
    %c0_7 = arith.constant 0 : index
    %17 = vector.load %arg3[%c96, %c0_7] : memref<97x160xbf16, #tpu.memory_space<vmem>>, vector<1x160xbf16>
    %18 = arith.extf %17 : vector<1x160xbf16> to vector<1x160xf32>
    %19 = vector.broadcast %18 : vector<1x160xf32> to vector<8x160xf32>
    %20 = arith.addf %16, %19 : vector<8x160xf32>
    %21 = vector.extract_strided_slice %20 {offsets = [0, 0], sizes = [8, 128], strides = [1, 1]} : vector<8x160xf32> to vector<8x128xf32>
    %cst_8 = arith.constant 5.000000e-01 : f32
    %22 = vector.broadcast %cst_8 : f32 to vector<8x128xf32>
    %23 = arith.mulf %22, %21 : vector<8x128xf32>
    %24 = arith.select %12, %23, %21 : vector<8x128xi1>, vector<8x128xf32>
    %25 = math.tanh %24 : vector<8x128xf32>
    %cst_9 = arith.constant 5.000000e-01 : f32
    %26 = vector.broadcast %cst_9 : f32 to vector<8x128xf32>
    %27 = arith.mulf %26, %25 : vector<8x128xf32>
    %cst_10 = arith.constant 5.000000e-01 : f32
    %28 = vector.broadcast %cst_10 : f32 to vector<8x128xf32>
    %29 = arith.addf %27, %28 : vector<8x128xf32>
    %30 = arith.select %12, %29, %25 : vector<8x128xi1>, vector<8x128xf32>
    %31 = vector.extract_strided_slice %30 {offsets = [0, 0], sizes = [8, 32], strides = [1, 1]} : vector<8x128xf32> to vector<8x32xf32>
    %32 = vector.extract_strided_slice %30 {offsets = [0, 32], sizes = [8, 32], strides = [1, 1]} : vector<8x128xf32> to vector<8x32xf32>
    %33 = vector.extract_strided_slice %30 {offsets = [0, 64], sizes = [8, 32], strides = [1, 1]} : vector<8x128xf32> to vector<8x32xf32>
    %34 = vector.extract_strided_slice %30 {offsets = [0, 96], sizes = [8, 32], strides = [1, 1]} : vector<8x128xf32> to vector<8x32xf32>
    %35 = arith.mulf %32, %6 : vector<8x32xf32>
    %36 = arith.mulf %31, %34 : vector<8x32xf32>
    %37 = arith.addf %35, %36 : vector<8x32xf32>
    %38 = math.tanh %37 : vector<8x32xf32>
    %39 = arith.mulf %33, %38 : vector<8x32xf32>
    %40 = vector.extract_strided_slice %20 {offsets = [0, 128], sizes = [8, 32], strides = [1, 1]} : vector<8x160xf32> to vector<8x32xf32>
    %cst_11 = arith.constant 0.000000e+00 : f32
    %41 = vector.broadcast %cst_11 : f32 to vector<8x32xf32>
    %42 = arith.maximumf %40, %41 : vector<8x32xf32>
    %43 = tpu.concatenate %39, %5 in 1 : vector<8x32xf32>, vector<8x32xf32> -> vector<8x64xf32>
    %44 = arith.truncf %43 : vector<8x64xf32> to vector<8x64xbf16>
    %c0_12 = arith.constant 0 : index
    %c0_13 = arith.constant 0 : index
    %45 = vector.load %arg4[%c0_12, %c0_13] : memref<65x128xbf16, #tpu.memory_space<vmem>>, vector<64x128xbf16>
    %cst_14 = arith.constant dense<0.000000e+00> : vector<8x128xf32>
    %46 = tpu.matmul %44, %45, %cst_14 {dimension_numbers = #tpu.dot_dimension_numbers<[1], [0], [0], [1], [0, 0, 1, 1], [], []>} : vector<8x64xbf16>, vector<64x128xbf16>, vector<8x128xf32> -> vector<8x128xf32>
    %c64 = arith.constant 64 : index
    %c0_15 = arith.constant 0 : index
    %47 = vector.load %arg4[%c64, %c0_15] : memref<65x128xbf16, #tpu.memory_space<vmem>>, vector<1x128xbf16>
    %48 = arith.extf %47 : vector<1x128xbf16> to vector<1x128xf32>
    %49 = vector.broadcast %48 : vector<1x128xf32> to vector<8x128xf32>
    %50 = arith.addf %46, %49 : vector<8x128xf32>
    %cst_16 = arith.constant 5.000000e-01 : f32
    %51 = vector.broadcast %cst_16 : f32 to vector<8x128xf32>
    %52 = arith.mulf %51, %50 : vector<8x128xf32>
    %53 = arith.select %12, %52, %50 : vector<8x128xi1>, vector<8x128xf32>
    %54 = math.tanh %53 : vector<8x128xf32>
    %cst_17 = arith.constant 5.000000e-01 : f32
    %55 = vector.broadcast %cst_17 : f32 to vector<8x128xf32>
    %56 = arith.mulf %55, %54 : vector<8x128xf32>
    %cst_18 = arith.constant 5.000000e-01 : f32
    %57 = vector.broadcast %cst_18 : f32 to vector<8x128xf32>
    %58 = arith.addf %56, %57 : vector<8x128xf32>
    %59 = arith.select %12, %58, %54 : vector<8x128xi1>, vector<8x128xf32>
    %60 = vector.extract_strided_slice %59 {offsets = [0, 0], sizes = [8, 32], strides = [1, 1]} : vector<8x128xf32> to vector<8x32xf32>
    %61 = vector.extract_strided_slice %59 {offsets = [0, 32], sizes = [8, 32], strides = [1, 1]} : vector<8x128xf32> to vector<8x32xf32>
    %62 = vector.extract_strided_slice %59 {offsets = [0, 64], sizes = [8, 32], strides = [1, 1]} : vector<8x128xf32> to vector<8x32xf32>
    %63 = vector.extract_strided_slice %59 {offsets = [0, 96], sizes = [8, 32], strides = [1, 1]} : vector<8x128xf32> to vector<8x32xf32>
    %64 = arith.mulf %61, %7 : vector<8x32xf32>
    %65 = arith.mulf %60, %63 : vector<8x32xf32>
    %66 = arith.addf %64, %65 : vector<8x32xf32>
    %67 = math.tanh %66 : vector<8x32xf32>
    %68 = arith.mulf %62, %67 : vector<8x32xf32>
    %69 = arith.addf %42, %68 : vector<8x32xf32>
    %70 = arith.truncf %69 : vector<8x32xf32> to vector<8x32xbf16>
    %c0_19 = arith.constant 0 : index
    %c0_20 = arith.constant 0 : index
    %71 = vector.load %arg5[%c0_19, %c0_20] : memref<33x128xbf16, #tpu.memory_space<vmem>>, vector<32x128xbf16>
    %cst_21 = arith.constant dense<0.000000e+00> : vector<8x128xf32>
    %72 = tpu.matmul %70, %71, %cst_21 {dimension_numbers = #tpu.dot_dimension_numbers<[1], [0], [0], [1], [0, 0, 1, 1], [], []>} : vector<8x32xbf16>, vector<32x128xbf16>, vector<8x128xf32> -> vector<8x128xf32>
    %c32 = arith.constant 32 : index
    %c0_22 = arith.constant 0 : index
    %73 = vector.load %arg5[%c32, %c0_22] : memref<33x128xbf16, #tpu.memory_space<vmem>>, vector<1x128xbf16>
    %74 = arith.extf %73 : vector<1x128xbf16> to vector<1x128xf32>
    %75 = vector.broadcast %74 : vector<1x128xf32> to vector<8x128xf32>
    %76 = arith.addf %72, %75 : vector<8x128xf32>
    %c0_23 = arith.constant 0 : index
    %c0_24 = arith.constant 0 : index
    %c0_25 = arith.constant 0 : index
    %77 = vector.load %arg6[%c0_23, %c0_24, %c0_25] : memref<1x8x128xf32, #tpu.memory_space<vmem>>, vector<1x8x128xf32>
    %78 = vector.shape_cast %77 : vector<1x8x128xf32> to vector<8x128xf32>
    %79 = vector.shape_cast %76 : vector<8x128xf32> to vector<1x8x128xf32>
    tpu.vector_store %arg6[%c0_23, %c0_24, %c0_25], %79 {strides = array<i32>} : memref<1x8x128xf32, #tpu.memory_space<vmem>>, vector<1x8x128xf32>,
    %80 = tpu.concatenate %39, %68, %37, %66 in 1 : vector<8x32xf32>, vector<8x32xf32>, vector<8x32xf32>, vector<8x32xf32> -> vector<8x128xf32>
    %c0_26 = arith.constant 0 : index
    %c0_27 = arith.constant 0 : index
    %81 = vector.load %arg7[%c0_26, %c0_27] : memref<8x128xf32, #tpu.memory_space<vmem>>, vector<8x128xf32>
    tpu.vector_store %arg7[%c0_26, %c0_27], %80 {strides = array<i32>} : memref<8x128xf32, #tpu.memory_space<vmem>>, vector<8x128xf32>,
    return
  }
  func.func @transform_0(%arg0: i32) -> (i32, i32, i32) {
    %c0_i32 = arith.constant 0 : i32
    %c0_i32_0 = arith.constant 0 : i32
    %c0_i32_1 = arith.constant 0 : i32
    return %arg0, %c0_i32, %c0_i32_0 : i32, i32, i32
  }
  func.func @transform_1(%arg0: i32) -> (i32, i32) {
    %c0_i32 = arith.constant 0 : i32
    %c0_i32_0 = arith.constant 0 : i32
    %c0_i32_1 = arith.constant 0 : i32
    return %c0_i32, %c0_i32_0 : i32, i32
  }
  func.func @transform_2(%arg0: i32) -> (i32, i32) {
    %c0_i32 = arith.constant 0 : i32
    %c0_i32_0 = arith.constant 0 : i32
    %c0_i32_1 = arith.constant 0 : i32
    return %c0_i32, %c0_i32_0 : i32, i32
  }
  func.func @transform_3(%arg0: i32) -> (i32, i32) {
    %c0_i32 = arith.constant 0 : i32
    %c0_i32_0 = arith.constant 0 : i32
    %c0_i32_1 = arith.constant 0 : i32
    return %c0_i32, %c0_i32_0 : i32, i32
  }
  func.func @transform_4(%arg0: i32) -> (i32, i32) {
    %c0_i32 = arith.constant 0 : i32
    %c0_i32_0 = arith.constant 0 : i32
    %c0_i32_1 = arith.constant 0 : i32
    return %c0_i32, %c0_i32_0 : i32, i32
  }
  func.func @transform_5(%arg0: i32) -> (i32, i32, i32) {
    %c0_i32 = arith.constant 0 : i32
    %c0_i32_0 = arith.constant 0 : i32
    %c0_i32_1 = arith.constant 0 : i32
    return %arg0, %c0_i32, %c0_i32_0 : i32, i32, i32
  }
  func.func @transform_6(%arg0: i32) -> (i32, i32) {
    %c0_i32 = arith.constant 0 : i32
    %c0_i32_0 = arith.constant 0 : i32
    %c0_i32_1 = arith.constant 0 : i32
    return %c0_i32, %c0_i32_0 : i32, i32
  }
}

</mosaic_0001>

<bundles_post_ra>
// kernel: decoder_forward.1
= control target key start
LH: loop header
LB: loop body
LE: loop exit
PB: predicated region body
PF: predicated region fallthrough
CT: control target
= control target key end

     0   :  { %s834_s21 = smov 0   ;;  %s989_s0 = inlined_call_operand.vmem [shape: bf16[8,8,64], index: 0, kind: input, shape index: {}]   ;;  %s990_s1 = inlined_call_operand.vmem [shape: f32[8,128], index: 1, kind: input, shape index: {}, may-alias: {1,6}]   ;;  %s991_s2 = inlined_call_operand.vmem [shape: bf16[97,160], index: 2, kind: input, shape index: {}]   ;;  %s992_s3 = inlined_call_operand.vmem [shape: bf16[65,128], index: 3, kind: input, shape index: {}]   ;;  %s993_s4 = inlined_call_operand.vmem [shape: bf16[33,128], index: 4, kind: input, shape index: {}]   ;;  %s994_s5 = inlined_call_operand.vmem [shape: f32[8,8,128], index: 5, kind: output, shape index: {0}]   ;;  %s995_s6 = inlined_call_operand.vmem [shape: f32[8,128], index: 6, kind: output, shape index: {1}, may-alias: {1,6}]  }
   0x1 LB: > { %s680_s22 = sadd.s32 4294967295, %s791_s21   ;;  %p684_p0 = scmp.ge.s32.totalorder %s791_s21, 1  ;;  %s791_s21 = sphi %s834_s21, %s17_s21  }
   0x2   : > { %p209_p1 = scmp.lt.s32.totalorder %s791_s21, 9 }
   0x4   : > { %p210_p2 = pnand %p684_p0, %p209_p1 }
   0x5   : > { %p237_p3 = scmp.lt.s32.totalorder (!%p210_p2), %s680_s22, 7  ;;  %p687_p4 = scmp.ne.s32.totalorder (!%p210_p2), %s680_s22, 0 }
   0x6   : > { %213 = sbr.rel (%p210_p2) target bundleno = 1783 (0x6f7), region = 40 }
   0xd   : > { %s238_s23 = scalar_select %p237_p3, %s680_s22, 7 }
   0xe   : > { %249 = sbr.rel (%p687_p4) target bundleno = 21 (0x15), region = 44  ;;  %v250_v0 = vld [vmem:[%s990_s1] sm:$0xff] (!%p687_p4) }
   0xf   : > { %s685_s24 = sshll.u32 %s238_s23, 2  ;;  %s686_s25 = sshll.u32 %s238_s23, 3  ;;  %251 = vst [vmem:[%s995_s6] sm:$0xff] (!%p687_p4), %v250_v0 }
  0x10   : > { %s845_s28 = scalar_lea.vmem %s989_s0, %s685_s24  ;;  %s850_s7 = scalar_lea.vmem %s994_s5, %s686_s25 }
  0x15 PF: > { %v753_v3 = vld [vmem:[%s991_s2 + $0x4] ss:$8 sps:$4 sm:$0xff]   ;;  %v755_v4 = vld [vmem:[%s991_s2] ss:$8 sps:$4 sm:$0xff]   ;;  %v793_v5 = vmov 0   ;;  %s794_s20 = smov 64   ;;  %v254_v19 = vlaneseq }
  0x16   : > { %v861_v1 = vld [vmem:[%s995_s6] sm:$0xff]  ;;  %383 = vmatprep.mubr.bf16.mxu0 %v793_v5  ;;  %v756_v6 = vld [vmem:[%s991_s2 + $0x14] ss:$8 sps:$4 sm:$0xff]   ;;  %351 = vmatprep.subr.bf16.mxu0 %v753_v3  ;;  %v758_v7 = vld [vmem:[%s991_s2 + $0x10] ss:$8 sps:$4 sm:$0xff]   ;;  %s795_s24 = smov 96  }
  0x17   : > { %v257_v2 = vpack.c.bf16 %v861_v1, %v861_v1  ;;  %352 = vmatpush1.bf16.msra.mxu0 %v755_v4  ;;  %399 = vrot.lane.b32.xlu1 %v861_v1, %s795_s24  ;;  %v759_v8 = vld [vmem:[%s991_s2 + $0x24] ss:$8 sps:$4 sm:$0xff]   ;;  %v761_v9 = vld [vmem:[%s991_s2 + $0x20] ss:$8 sps:$4 sm:$0xff]   ;;  %v762_v10 = vld [vmem:[%s991_s2 + $0x34] ss:$8 sps:$4 sm:$0xff]  }
  0x18   : > { %353 = vmatprep.subr.bf16.mxu0 %v756_v6  ;;  %v764_v11 = vld [vmem:[%s991_s2 + $0x30] ss:$8 sps:$4 sm:$0xff]   ;;  %v765_v12 = vld [vmem:[%s991_s2 + $0x44] ss:$8 sps:$4 sm:$0xff]   ;;  %v767_v13 = vld [vmem:[%s991_s2 + $0x40] ss:$8 sps:$4 sm:$0xff]  }
  0x19   : > { %259 = vrot.lane.b32.xlu0 %v257_v2, %s794_s20  ;;  %v768_v14 = vld [vmem:[%s991_s2 + $0x54] ss:$8 sps:$4 sm:$0xff]   ;;  %v770_v15 = vld [vmem:[%s991_s2 + $0x50] ss:$8 sps:$4 sm:$0xff]   ;;  %v253_v16 = vld [vmem:[%s845_s28] sm:$0xf] }
  0x1a   : > { %vm261_vm0 = vcmask 523264   ;;  %vm348_vm1 = vcmask 785408   ;;  %v281_v20 = vshrl.u32 %v254_v19, 7  ;;  %v910_v21 = vld [vmem:[%s991_s2 + $0x60] sm:$0x11]  ;;  %v916_v25 = vand.u32 127, %v254_v19 }
  0x1b   : > { %354 = vmatpush1.bf16.msra.mxu0 %v758_v7  ;;  %v278_v22 = vunpack.c.l.bf16 %v910_v21  ;;  %s796_s28 = smov 32   ;;  %v771_v43 = vld [vmem:[%s992_s3] sm:$0xff]   ;;  %v797_v44 = vmov 0.0   ;;  %v772_v45 = vld [vmem:[%s992_s3 + $0x8] sm:$0xff]   ;;  %v773_v46 = vld [vmem:[%s992_s3 + $0x10] sm:$0xff]   ;;  %vm798_vm3 = vmmov 0  }
  0x1c   : > { %355 = vmatprep.subr.bf16.mxu0 %v759_v8  ;;  %v913_v23 = vsub.s32 0, %v281_v20  ;;  %vm256_vm2 = vcmp.lt.s32.totalorder %v916_v25, 96  ;;  %719 = vmatprep.subr.bf16.mxu1 %v797_v44  ;;  %v774_v48 = vld [vmem:[%s992_s3 + $0x18] sm:$0xff]   ;;  %vm424_vm4 = vcmask 261120   ;;  %v435_v54 = vld [vmem:[%s992_s3 + $0x20] sm:$0x1] }
  0x1d   : > { %720 = vmatpush3.bf16.msra.mxu1 %v771_v43  ;;  %727 = vmatprep.mubr.msk.bf16.mxu1 %vm798_vm3, %v797_v44  ;;  %v436_v55 = vunpack.c.l.bf16 %v435_v54 }
  0x1e   : > { %v283_v24 = vrot.slane %v278_v22, %v913_v23  ;;  %721 = vmatprep.subr.bf16.mxu1 %v797_v44 }
  0x1f   : > { %356 = vmatpush1.bf16.msra.mxu0 %v761_v9  ;;  %v440_v56 = vrot.slane %v436_v55, %v913_v23 }
  0x20   : > { %357 = vmatprep.subr.bf16.mxu0 %v762_v10  ;;  %v775_v10 = vld [vmem:[%s993_s4] sm:$0xff]  }
  0x21   : > { %722 = vmatpush3.bf16.msra.mxu1 %v772_v45 }
  0x22   : > { %723 = vmatprep.subr.bf16.mxu1 %v797_v44 }
  0x23   : > { %358 = vmatpush1.bf16.msra.mxu0 %v764_v11 }
  0x24   : > { %359 = vmatprep.subr.bf16.mxu0 %v765_v12  ;;  %v776_v12 = vld [vmem:[%s993_s4 + $0x8] sm:$0xff]  }
  0x25   : > { %724 = vmatpush3.bf16.msra.mxu1 %v773_v46 }
  0x26   : > { %725 = vmatprep.subr.bf16.mxu1 %v797_v44 }
  0x27   : > { %360 = vmatpush1.bf16.msra.mxu0 %v767_v13 }
  0x28   : > { %361 = vmatprep.subr.bf16.mxu0 %v768_v14 }
  0x29   : > { %726 = vmatpush3.bf16.msra.mxu1 %v774_v48 }
  0x2a   : > { %731 = vmatprep.subr.bf16.mxu1 %v797_v44 }
  0x2b   : > { %362 = vmatpush1.bf16.msra.mxu0 %v770_v15  ;;  %v279_v15 = vunpack.c.h.bf16 %v910_v21 }
  0x89   : > { %v400_v39 = vpop.permute.xlu1 %399 }
  0x8b   : > { %v260_v17 = vpop.permute.xlu0 %259 }
  0x8c   : > { %v264_v18 = vsel %vm261_vm0, %v253_v16, %v260_v17  ;;  %v287_v16 = vrot.slane %v279_v15, %v913_v23 }
  0x8d   : > { %700 = vmatmul.mubr.msk.bf16.vlgmr.msra.gmra.mrb[0].mxu0 %vm348_vm1, %v264_v18 }
 0x160   : > { %v385_v26 = vpop.f32.mrb[0].mxu0 }
 0x161   : > { %v386_v27 = vadd.f32 %v385_v26, %v283_v24  ;;  %v918_v28 = vpop.f32.mrb[1].mxu0 }
 0x162   : > { %v389_v29 = vpop.f32.mrb[2].mxu0  ;;  %v388_v17 = vadd.f32 %v918_v28, %v287_v16  ;;  %v544_v28 = vld [vmem:[%s993_s4 + $0x10] sm:$0x1] }
 0x163   : > { %v392_v30 = vmul.f32 0.5, %v386_v27  ;;  %v390_v31 = vpop.f32.mrb[3].mxu0 }
 0x164   : > { %v419_v18 = vmax.f32 %v388_v17, 0.0 }
 0x165   : > { %v393_v32 = vsel %vm256_vm2, %v392_v30, %v386_v27  ;;  %v545_v30 = vunpack.c.l.bf16 %v544_v28 }
 0x166   : > { %777 = vtanh.f32 %v393_v32 }
 0x167   : > { %v549_v31 = vrot.slane %v545_v30, %v913_v23 }
 0x170   : > { %v778_v33 = vpop.eup %777 }
 0x171   : > { %v395_v34 = vmul.f32 0.5, %v778_v33 }
 0x173   : > { %v396_v35 = vadd.f32 0.5, %v395_v34 }
 0x175   : > { %v397_v36 = vsel %vm256_vm2, %v396_v35, %v778_v33 }
 0x176   : > { %404 = vrot.lane.b32.xlu0 %v397_v36, %s796_s28  ;;  %v402_v40 = vmul.f32 %v400_v39, %v397_v36 }
 0x1e8   : > { %v405_v37 = vpop.permute.xlu0 %404 }
 0x1e9   : > { %v407_v38 = vmul.f32 %v405_v37, %v397_v36 }
 0x1eb   : > { %409 = vrot.lane.b32.xlu1 %v407_v38, %s796_s28 }
 0x25d   : > { %v410_v41 = vpop.permute.xlu1 %409 }
 0x25e   : > { %v927_v42 = vadd.f32 %v410_v41, %v402_v40 }
 0x260   : > { %779 = vtanh.f32 %v927_v42 }
 0x26a   : > { %v780_v47 = vpop.eup %779 }
 0x26b   : > { %415 = vrot.lane.b32.xlu0 %v780_v47, %s796_s28 }
 0x2dd   : > { %v416_v49 = vpop.permute.xlu0 %415 }
 0x2de   : > { %v418_v50 = vmul.f32 %v416_v49, %v397_v36 }
 0x2e0   : > { %421 = vrot.lane.b32.xlu1 %v418_v50, %s794_s20 }
 0x2e4   : > { %514 = vrot.lane.b32.xlu1 %v861_v1, %s794_s20 }
 0x352   : > { %v422_v51 = vpop.permute.xlu1 %421 }
 0x353   : > { %v425_v52 = vsel %vm424_vm4, %v422_v51, %v861_v1 }
 0x354   : > { %v426_v53 = vpack.c.bf16 %v425_v52, %v425_v52 }
 0x356   : > { %728 = vmatmul.mubr.msk.bf16.vlgmr.msra.gmra.mrb[0].mxu1 %vm261_vm0, %v426_v53  ;;  %v515_v6 = vpop.permute.xlu1 %514 }
 0x357   : > { %735 = vmatprep.mubr.msk.bf16.mxu1 %vm798_vm3, %v797_v44  ;;  %732 = vmatpush3.bf16.msra.mxu1 %v775_v10 }
 0x358   : > { %733 = vmatprep.subr.bf16.mxu1 %v797_v44 }
 0x35b   : > { %734 = vmatpush3.bf16.msra.mxu1 %v776_v12 }
 0x429   : > { %v502_v57 = vpop.f32.mrb[0].mxu1 }
 0x42a   : > { %v503_v58 = vadd.f32 %v502_v57, %v440_v56  ;;  %v729_v59 = vpop.f32.mrb[1].mxu1 }
 0x42b   : > { %v505_v60 = vpop.f32.mrb[2].mxu1 }
 0x42c   : > { %v508_v61 = vmul.f32 0.5, %v503_v58  ;;  %v730_v62 = vpop.f32.mrb[3].mxu1 }
 0x42e   : > { %v509_v63 = vsel %vm256_vm2, %v508_v61, %v503_v58 }
 0x42f   : > { %781 = vtanh.f32 %v509_v63 }
 0x439   : > { %v782_v0 = vpop.eup %781 }
 0x43a   : > { %v511_v1 = vmul.f32 0.5, %v782_v0 }
 0x43c   : > { %v512_v2 = vadd.f32 0.5, %v511_v1 }
 0x43e   : > { %v513_v3 = vsel %vm256_vm2, %v512_v2, %v782_v0 }
 0x43f   : > { %519 = vrot.lane.b32.xlu0 %v513_v3, %s796_s28  ;;  %v517_v7 = vmul.f32 %v515_v6, %v513_v3 }
 0x4b1   : > { %v520_v4 = vpop.permute.xlu0 %519 }
 0x4b2   : > { %v522_v5 = vmul.f32 %v520_v4, %v513_v3 }
 0x4b4   : > { %524 = vrot.lane.b32.xlu0 %v522_v5, %s796_s28 }
 0x526   : > { %v525_v8 = vpop.permute.xlu0 %524 }
 0x527   : > { %v527_v9 = vadd.f32 %v525_v8, %v517_v7 }
 0x529   : > { %783 = vtanh.f32 %v527_v9 }
 0x533   : > { %v784_v11 = vpop.eup %783 }
 0x534   : > { %530 = vrot.lane.b32.xlu1 %v784_v11, %s796_s28 }
 0x5a6   : > { %v531_v13 = vpop.permute.xlu1 %530 }
 0x5a7   : > { %v533_v14 = vmul.f32 %v531_v13, %v513_v3 }
 0x5a9   : > { %606 = vrot.lane.b32.xlu1 %v533_v14, %s795_s24  ;;  %535 = vrot.lane.b32.xlu0 %v533_v14, %s794_s20 }
 0x5ad   : > { %614 = vrot.lane.b32.xlu1 %v527_v9, %s794_s20  ;;  %610 = vrot.lane.b32.xlu0 %v927_v42, %s796_s28 }
 0x61b   : > { %v607_v19 = vpop.permute.xlu1 %606  ;;  %v536_v20 = vpop.permute.xlu0 %535 }
 0x61c   : > { %v538_v22 = vadd.f32 %v536_v20, %v419_v18  ;;  %v617_v25 = vsel %vm424_vm4, %v422_v51, %v607_v19 }
 0x61e   : > { %v539_v24 = vpack.c.bf16 %v538_v22, %v538_v22 }
 0x61f   : > { %v615_v26 = vpop.permute.xlu1 %614  ;;  %v611_v27 = vpop.permute.xlu0 %610 }
 0x620   : > { %v618_v29 = vsel %vm261_vm0, %v617_v25, %v611_v27  ;;  %736 = vmatmul.mubr.msk.bf16.vlgmr.msra.gmra.mrb[4].mxu1 %vm424_vm4, %v539_v24 }
 0x621   : > { %v619_v21 = vsel %vm348_vm1, %v618_v29, %v615_v26 }
 0x622   : > { %620 = vst [vmem:[%s995_s6] sm:$0xff] %v619_v21 }
 0x6f3   : > { %v599_v32 = vpop.f32.mrb[4].mxu1 }
 0x6f4   : > { %v600_v33 = vadd.f32 %v599_v32, %v549_v31  ;;  %v737_v34 = vpop.f32.mrb[5].mxu1 }
 0x6f5   : > { %v602_v35 = vpop.f32.mrb[6].mxu1 }
 0x6f6   : > { %605 = vst [vmem:[%s850_s7] sm:$0xff] %v600_v33  ;;  %v738_v36 = vpop.f32.mrb[7].mxu1 }
 0x6f7 PF: > { %s17_s21 = sadd.s32 1, %s791_s21  }
 0x6f8   : > { %p14_p5 = scmp.ge.s32.totalorder %s17_s21, 10  }
 0x6fa   :  { %16 = sbr.rel (!%p14_p5) target bundleno = 1 (0x1), region = 82 }

</bundles_post_ra>
